<compile_context>
chip_gen: v6e
topology: v6e:2x2x1
jax: 0.10.0
libtpu: 0.0.40
codegen_flags: <defaults>
</compile_context>

<pallas_src>
import functools

import jax
import jax.numpy as jnp
import numpy as np
from jax import lax
from jax.experimental import pallas as pl
from jax.experimental.pallas import tpu as pltpu


_LANE = 128  # lane-tile width


def _ccm_pdc_kernel(x_ref, w1_ref, b1_ref, w2_ref, b2_ref, o_ref, xpad_ref,
                    *, Cin, H, W, LPAD):
    # x_ref:    (1, Cin, H*W)   one image, channels on sublanes, pixels on lanes
    # w1_ref:   (9, Chid, Cin)  3x3 conv weights per tap k = kh*3 + kw, bf16
    # b1_ref:   (Chid, 1)       f32
    # w2_ref:   (Cout, Chid)    1x1 conv weights, f32
    # b2_ref:   (Cout, 1)       f32
    # o_ref:    (1, Cout, H*W)
    # xpad_ref: (Cin, LPAD + H*W + (W+1))  VMEM scratch: halo-padded flat image
    HW = H * W
    RPAD = W + 1

    # --- halo strips -> zero (cheap, HW-independent, megacore-safe) ---------
    xpad_ref[:, :LPAD] = jnp.zeros((Cin, LPAD), jnp.float32)
    xpad_ref[:, LPAD + HW:LPAD + HW + RPAD] = jnp.zeros((Cin, RPAD), jnp.float32)
    # --- interior: lane-aligned copy of the flattened image -----------------
    xpad_ref[:, LPAD:LPAD + HW] = x_ref[0]

    # Horizontal edge masks, hoisted out of the tap loop (vertical halo is
    # handled by the zeroed strips).  Shape (1, HW), broadcast against taps.
    col = lax.broadcasted_iota(jnp.int32, (1, HW), 1) % W
    mask_l = col >= 1          # valid lanes for dx = -1 taps
    mask_r = col <= W - 2      # valid lanes for dx = +1 taps

    # --- 3x3 conv: 9 shifted taps x small MXU contractions, f32 accumulate --
    acc = None
    for k in range(9):
        dy, dx = k // 3 - 1, k % 3 - 1
        start = LPAD + dy * W + dx
        tap = xpad_ref[:, start:start + HW]            # (Cin, HW), static slice
        if dx == -1:
            tap = jnp.where(mask_l, tap, 0.0)          # mask left-edge row wrap
        elif dx == 1:
            tap = jnp.where(mask_r, tap, 0.0)          # mask right-edge row wrap
        part = jnp.dot(w1_ref[k], tap.astype(jnp.bfloat16),
                       preferred_element_type=jnp.float32)   # (Chid, HW)
        acc = part if acc is None else acc + part

    # --- bias + ReLU + 1x1 conv + bias, fused --------------------------------
    hidden = jnp.maximum(acc + b1_ref[...], 0.0)              # (Chid, HW) f32
    out = jnp.dot(w2_ref[...], hidden,
                  preferred_element_type=jnp.float32)         # (Cout, HW)
    o_ref[0] = (out + b2_ref[...]).astype(o_ref.dtype)        # dense lane store


def ccm_pdc_pallas(x_nchw, w1_oihw, b1, w2_oihw, b2):
    """Forward pass of CCM_PDC. x_nchw: (N, Cin, H, W); weights in PyTorch OIHW."""
    N, Cin, H, W = x_nchw.shape
    Chid = w1_oihw.shape[0]
    Cout = w2_oihw.shape[0]
    HW = H * W
    LPAD = ((W + 1 + _LANE - 1) // _LANE) * _LANE   # lane-aligned left halo >= W+1
    RPAD = W + 1
    XW = LPAD + HW + RPAD

    # Free (contiguous) reshape only: keep NCHW, flatten H*W onto the lane axis.
    x_flat = x_nchw.reshape(N, Cin, HW)

    # (Chid, Cin, 3, 3) -> (3, 3, Chid, Cin) -> (9, Chid, Cin); bf16 for the MXU.
    w1_k = jnp.transpose(w1_oihw, (2, 3, 0, 1)).reshape(9, Chid, Cin).astype(jnp.bfloat16)
    w2_k = w2_oihw[:, :, 0, 0].astype(jnp.float32)   # (Cout, Chid)
    b1_k = b1.reshape(Chid, 1).astype(jnp.float32)
    b2_k = b2.reshape(Cout, 1).astype(jnp.float32)

    kernel = functools.partial(_ccm_pdc_kernel, Cin=Cin, H=H, W=W, LPAD=LPAD)

    # VMEM budget: xpad scratch + double-buffered I/O blocks + weights + live
    # intermediates, with 2x headroom.  Never below 32 MiB (so larger images
    # still compile on v5e's 16 MiB default scoped limit), capped safely below
    # v7x's 64 MiB physical VMEM.
    needed = 4 * (Cin * XW + 2 * Cin * HW + 2 * Cout * HW
                  + (Chid + Cout + 2 * Cin) * HW) \
             + 2 * (2 * 9 * Chid * Cin + 4 * (Chid + Cout * Chid + Cout))
    vmem_limit = int(min(max(2 * needed, 32 * 1024 * 1024), 56 * 1024 * 1024))

    out_flat = pl.pallas_call(
        kernel,
        out_shape=jax.ShapeDtypeStruct((N, Cout, HW), x_nchw.dtype),
        grid_spec=pltpu.PrefetchScalarGridSpec(
            num_scalar_prefetch=0,
            grid=(N,),
            in_specs=[
                pl.BlockSpec((1, Cin, HW), lambda n: (n, 0, 0)),
                pl.BlockSpec((9, Chid, Cin), lambda n: (0, 0, 0)),
                pl.BlockSpec((Chid, 1), lambda n: (0, 0)),
                pl.BlockSpec((Cout, Chid), lambda n: (0, 0)),
                pl.BlockSpec((Cout, 1), lambda n: (0, 0)),
            ],
            out_specs=pl.BlockSpec((1, Cout, HW), lambda n: (n, 0, 0)),
            scratch_shapes=[
                pltpu.VMEM((Cin, XW), jnp.float32),   # halo-padded flat image
            ],
        ),
        compiler_params=pltpu.CompilerParams(
            dimension_semantics=("parallel",),
            vmem_limit_bytes=vmem_limit),
    )(x_flat, w1_k, b1_k, w2_k, b2_k)

    return out_flat.reshape(N, Cout, H, W)


def ccm_pdc_reference(x_nchw, w1_oihw, b1, w2_oihw, b2):
    """Pure-JAX f32 reference mirroring the PyTorch module (NCHW)."""
    dn = lax.conv_dimension_numbers(x_nchw.shape, w1_oihw.shape,
                                    ('NCHW', 'OIHW', 'NCHW'))
    h = lax.conv_general_dilated(x_nchw, w1_oihw, (1, 1), ((1, 1), (1, 1)),
                                 dimension_numbers=dn)
    h = h + b1[None, :, None, None]
    h = jnp.maximum(h, 0.0)
    dn2 = lax.conv_dimension_numbers(h.shape, w2_oihw.shape,
                                     ('NCHW', 'OIHW', 'NCHW'))
    o = lax.conv_general_dilated(h, w2_oihw, (1, 1), ((0, 0), (0, 0)),
                                 dimension_numbers=dn2)
    return o + b2[None, :, None, None]


if __name__ == "__main__":
    # Module config: dim=4, out_dim=4, growth_rate=2.0 -> hidden_dim=8
    dim, out_dim, growth_rate = 4, 4, 2.0
    hidden_dim = int(dim * growth_rate)
    N, H, W = 2, 16, 16

    key = jax.random.PRNGKey(0)
    kx, kw1, kb1, kw2, kb2 = jax.random.split(key, 5)

    x = jax.random.normal(kx, (N, dim, H, W), dtype=jnp.float32)
    # Deterministic synthetic parameters (PyTorch Conv2d weight layout OIHW).
    w1 = jax.random.normal(kw1, (hidden_dim, dim, 3, 3), dtype=jnp.float32) * 0.1
    b1 = jax.random.normal(kb1, (hidden_dim,), dtype=jnp.float32) * 0.1
    w2 = jax.random.normal(kw2, (out_dim, hidden_dim, 1, 1), dtype=jnp.float32) * 0.1
    b2 = jax.random.normal(kb2, (out_dim,), dtype=jnp.float32) * 0.1

    out = jax.block_until_ready(ccm_pdc_pallas(x, w1, b1, w2, b2))
    ref = jax.block_until_ready(ccm_pdc_reference(x, w1, b1, w2, b2))

    # Tolerance accounts for bf16 operands on the 3x3 contraction (f32 accumulate).
    np.testing.assert_allclose(np.asarray(out), np.asarray(ref),
                               rtol=2e-2, atol=2e-2)
    print("KERNEL_OK")
</pallas_src>

<mosaic_0001>
module attributes {stable_mosaic.version = 11 : i64} {
  func.func @_ccm_pdc_kernel(%arg0: i32, %arg1: memref<1x4x256xf32, #tpu.memory_space<vmem>>, %arg2: memref<9x8x4xbf16, #tpu.memory_space<vmem>>, %arg3: memref<8x1xf32, #tpu.memory_space<vmem>>, %arg4: memref<4x8xf32, #tpu.memory_space<vmem>>, %arg5: memref<4x1xf32, #tpu.memory_space<vmem>>, %arg6: memref<1x4x256xf32, #tpu.memory_space<vmem>>, %arg7: memref<4x401xf32, #tpu.memory_space<vmem>>) attributes {dimension_semantics = [#tpu.dimension_semantics<parallel>], iteration_bounds = array<i64: 2>, scalar_prefetch = 0 : i64, scratch_operands = 1 : i64, tpu.core_type = #tpu.core_type<tc>, window_params = [{transform_indices = @transform_0, window_bounds = array<i64: 1, 4, 256>}, {pipeline_mode = #tpu.pipeline_mode<synchronous>, transform_indices = @transform_1, window_bounds = array<i64: 9, 8, 4>}, {pipeline_mode = #tpu.pipeline_mode<synchronous>, transform_indices = @transform_2, window_bounds = array<i64: 8, 1>}, {pipeline_mode = #tpu.pipeline_mode<synchronous>, transform_indices = @transform_3, window_bounds = array<i64: 4, 8>}, {pipeline_mode = #tpu.pipeline_mode<synchronous>, transform_indices = @transform_4, window_bounds = array<i64: 4, 1>}, {transform_indices = @transform_5, window_bounds = array<i64: 1, 4, 256>}]} {
    %cst = arith.constant 0.000000e+00 : f32
    %0 = vector.broadcast %cst : f32 to vector<4x128xf32>
    %c0 = arith.constant 0 : index
    %c0_0 = arith.constant 0 : index
    %1 = vector.load %arg7[%c0, %c0_0] : memref<4x401xf32, #tpu.memory_space<vmem>>, vector<4x128xf32>
    tpu.vector_store %arg7[%c0, %c0_0], %0 {strides = array<i32>} : memref<4x401xf32, #tpu.memory_space<vmem>>, vector<4x128xf32>,
    %cst_1 = arith.constant 0.000000e+00 : f32
    %2 = vector.broadcast %cst_1 : f32 to vector<4x17xf32>
    %c0_2 = arith.constant 0 : index
    %c384 = arith.constant 384 : index
    %3 = vector.load %arg7[%c0_2, %c384] : memref<4x401xf32, #tpu.memory_space<vmem>>, vector<4x17xf32>
    tpu.vector_store %arg7[%c0_2, %c384], %2 {strides = array<i32>} : memref<4x401xf32, #tpu.memory_space<vmem>>, vector<4x17xf32>,
    %c0_3 = arith.constant 0 : index
    %c0_4 = arith.constant 0 : index
    %c0_5 = arith.constant 0 : index
    %4 = vector.load %arg1[%c0_3, %c0_4, %c0_5] : memref<1x4x256xf32, #tpu.memory_space<vmem>>, vector<1x4x256xf32>
    %5 = vector.shape_cast %4 : vector<1x4x256xf32> to vector<4x256xf32>
    %c0_6 = arith.constant 0 : index
    %c128 = arith.constant 128 : index
    %6 = vector.load %arg7[%c0_6, %c128] : memref<4x401xf32, #tpu.memory_space<vmem>>, vector<4x256xf32>
    tpu.vector_store %arg7[%c0_6, %c128], %5 {strides = array<i32>} : memref<4x401xf32, #tpu.memory_space<vmem>>, vector<4x256xf32>,
    %7 = tpu.iota {dimensions = array<i32: 1>} : vector<1x256xi32>
    %c16_i32 = arith.constant 16 : i32
    %c0_i32 = arith.constant 0 : i32
    %8 = arith.cmpi eq, %c16_i32, %c0_i32 : i32
    %c1_i32 = arith.constant 1 : i32
    %9 = arith.select %8, %c1_i32, %c16_i32 : i32
    %10 = vector.broadcast %9 : i32 to vector<1x256xi32>
    %11 = arith.remsi %7, %10 : vector<1x256xi32>
    %c0_i32_7 = arith.constant 0 : i32
    %12 = vector.broadcast %c0_i32_7 : i32 to vector<1x256xi32>
    %13 = arith.cmpi ne, %11, %12 : vector<1x256xi32>
    %c0_i32_8 = arith.constant 0 : i32
    %14 = vector.broadcast %c0_i32_8 : i32 to vector<1x256xi32>
    %15 = arith.cmpi slt, %11, %14 : vector<1x256xi32>
    %c0_i32_9 = arith.constant 0 : i32
    %16 = arith.cmpi slt, %9, %c0_i32_9 : i32
    %17 = vector.broadcast %16 : i1 to vector<1x256xi1>
    %18 = vector.broadcast %17 : vector<1x256xi1> to vector<1x256xi1>
    %19 = arith.xori %15, %18 : vector<1x256xi1>
    %20 = arith.andi %19, %13 : vector<1x256xi1>
    %21 = vector.broadcast %9 : i32 to vector<1x256xi32>
    %22 = arith.addi %11, %21 : vector<1x256xi32>
    %23 = arith.select %20, %22, %11 : vector<1x256xi1>, vector<1x256xi32>
    %c1_i32_10 = arith.constant 1 : i32
    %24 = vector.broadcast %c1_i32_10 : i32 to vector<1x256xi32>
    %25 = arith.cmpi sge, %23, %24 : vector<1x256xi32>
    %c14_i32 = arith.constant 14 : i32
    %26 = vector.broadcast %c14_i32 : i32 to vector<1x256xi32>
    %27 = arith.cmpi sle, %23, %26 : vector<1x256xi32>
    %c0_11 = arith.constant 0 : index
    %c111 = arith.constant 111 : index
    %28 = vector.load %arg7[%c0_11, %c111] : memref<4x401xf32, #tpu.memory_space<vmem>>, vector<4x256xf32>
    %cst_12 = arith.constant 0.000000e+00 : f32
    %29 = vector.shape_cast %25 : vector<1x256xi1> to vector<1x256xi1>
    %30 = vector.broadcast %29 : vector<1x256xi1> to vector<4x256xi1>
    %31 = vector.broadcast %cst_12 : f32 to vector<4x256xf32>
    %32 = arith.select %30, %28, %31 : vector<4x256xi1>, vector<4x256xf32>
    %c0_13 = arith.constant 0 : index
    %c0_14 = arith.constant 0 : index
    %c0_15 = arith.constant 0 : index
    %33 = vector.load %arg2[%c0_13, %c0_14, %c0_15] : memref<9x8x4xbf16, #tpu.memory_space<vmem>>, vector<1x8x4xbf16>
    %34 = vector.shape_cast %33 : vector<1x8x4xbf16> to vector<8x4xbf16>
    %35 = arith.truncf %32 : vector<4x256xf32> to vector<4x256xbf16>
    %cst_16 = arith.constant dense<0.000000e+00> : vector<8x256xf32>
    %36 = tpu.matmul %34, %35, %cst_16 {dimension_numbers = #tpu.dot_dimension_numbers<[1], [0], [0], [1], [0, 0, 1, 1], [], []>} : vector<8x4xbf16>, vector<4x256xbf16>, vector<8x256xf32> -> vector<8x256xf32>
    %c0_17 = arith.constant 0 : index
    %c112 = arith.constant 112 : index
    %37 = vector.load %arg7[%c0_17, %c112] : memref<4x401xf32, #tpu.memory_space<vmem>>, vector<4x256xf32>
    %c1 = arith.constant 1 : index
    %c0_18 = arith.constant 0 : index
    %c0_19 = arith.constant 0 : index
    %38 = vector.load %arg2[%c1, %c0_18, %c0_19] : memref<9x8x4xbf16, #tpu.memory_space<vmem>>, vector<1x8x4xbf16>
    %39 = vector.shape_cast %38 : vector<1x8x4xbf16> to vector<8x4xbf16>
    %40 = arith.truncf %37 : vector<4x256xf32> to vector<4x256xbf16>
    %cst_20 = arith.constant dense<0.000000e+00> : vector<8x256xf32>
    %41 = tpu.matmul %39, %40, %cst_20 {dimension_numbers = #tpu.dot_dimension_numbers<[1], [0], [0], [1], [0, 0, 1, 1], [], []>} : vector<8x4xbf16>, vector<4x256xbf16>, vector<8x256xf32> -> vector<8x256xf32>
    %42 = arith.addf %36, %41 : vector<8x256xf32>
    %c0_21 = arith.constant 0 : index
    %c113 = arith.constant 113 : index
    %43 = vector.load %arg7[%c0_21, %c113] : memref<4x401xf32, #tpu.memory_space<vmem>>, vector<4x256xf32>
    %cst_22 = arith.constant 0.000000e+00 : f32
    %44 = vector.shape_cast %27 : vector<1x256xi1> to vector<1x256xi1>
    %45 = vector.broadcast %44 : vector<1x256xi1> to vector<4x256xi1>
    %46 = vector.broadcast %cst_22 : f32 to vector<4x256xf32>
    %47 = arith.select %45, %43, %46 : vector<4x256xi1>, vector<4x256xf32>
    %c2 = arith.constant 2 : index
    %c0_23 = arith.constant 0 : index
    %c0_24 = arith.constant 0 : index
    %48 = vector.load %arg2[%c2, %c0_23, %c0_24] : memref<9x8x4xbf16, #tpu.memory_space<vmem>>, vector<1x8x4xbf16>
    %49 = vector.shape_cast %48 : vector<1x8x4xbf16> to vector<8x4xbf16>
    %50 = arith.truncf %47 : vector<4x256xf32> to vector<4x256xbf16>
    %cst_25 = arith.constant dense<0.000000e+00> : vector<8x256xf32>
    %51 = tpu.matmul %49, %50, %cst_25 {dimension_numbers = #tpu.dot_dimension_numbers<[1], [0], [0], [1], [0, 0, 1, 1], [], []>} : vector<8x4xbf16>, vector<4x256xbf16>, vector<8x256xf32> -> vector<8x256xf32>
    %52 = arith.addf %42, %51 : vector<8x256xf32>
    %c0_26 = arith.constant 0 : index
    %c127 = arith.constant 127 : index
    %53 = vector.load %arg7[%c0_26, %c127] : memref<4x401xf32, #tpu.memory_space<vmem>>, vector<4x256xf32>
    %cst_27 = arith.constant 0.000000e+00 : f32
    %54 = vector.shape_cast %25 : vector<1x256xi1> to vector<1x256xi1>
    %55 = vector.broadcast %54 : vector<1x256xi1> to vector<4x256xi1>
    %56 = vector.broadcast %cst_27 : f32 to vector<4x256xf32>
    %57 = arith.select %55, %53, %56 : vector<4x256xi1>, vector<4x256xf32>
    %c3 = arith.constant 3 : index
    %c0_28 = arith.constant 0 : index
    %c0_29 = arith.constant 0 : index
    %58 = vector.load %arg2[%c3, %c0_28, %c0_29] : memref<9x8x4xbf16, #tpu.memory_space<vmem>>, vector<1x8x4xbf16>
    %59 = vector.shape_cast %58 : vector<1x8x4xbf16> to vector<8x4xbf16>
    %60 = arith.truncf %57 : vector<4x256xf32> to vector<4x256xbf16>
    %cst_30 = arith.constant dense<0.000000e+00> : vector<8x256xf32>
    %61 = tpu.matmul %59, %60, %cst_30 {dimension_numbers = #tpu.dot_dimension_numbers<[1], [0], [0], [1], [0, 0, 1, 1], [], []>} : vector<8x4xbf16>, vector<4x256xbf16>, vector<8x256xf32> -> vector<8x256xf32>
    %62 = arith.addf %52, %61 : vector<8x256xf32>
    %c0_31 = arith.constant 0 : index
    %c128_32 = arith.constant 128 : index
    %63 = vector.load %arg7[%c0_31, %c128_32] : memref<4x401xf32, #tpu.memory_space<vmem>>, vector<4x256xf32>
    %c4 = arith.constant 4 : index
    %c0_33 = arith.constant 0 : index
    %c0_34 = arith.constant 0 : index
    %64 = vector.load %arg2[%c4, %c0_33, %c0_34] : memref<9x8x4xbf16, #tpu.memory_space<vmem>>, vector<1x8x4xbf16>
    %65 = vector.shape_cast %64 : vector<1x8x4xbf16> to vector<8x4xbf16>
    %66 = arith.truncf %63 : vector<4x256xf32> to vector<4x256xbf16>
    %cst_35 = arith.constant dense<0.000000e+00> : vector<8x256xf32>
    %67 = tpu.matmul %65, %66, %cst_35 {dimension_numbers = #tpu.dot_dimension_numbers<[1], [0], [0], [1], [0, 0, 1, 1], [], []>} : vector<8x4xbf16>, vector<4x256xbf16>, vector<8x256xf32> -> vector<8x256xf32>
    %68 = arith.addf %62, %67 : vector<8x256xf32>
    %c0_36 = arith.constant 0 : index
    %c129 = arith.constant 129 : index
    %69 = vector.load %arg7[%c0_36, %c129] : memref<4x401xf32, #tpu.memory_space<vmem>>, vector<4x256xf32>
    %cst_37 = arith.constant 0.000000e+00 : f32
    %70 = vector.shape_cast %27 : vector<1x256xi1> to vector<1x256xi1>
    %71 = vector.broadcast %70 : vector<1x256xi1> to vector<4x256xi1>
    %72 = vector.broadcast %cst_37 : f32 to vector<4x256xf32>
    %73 = arith.select %71, %69, %72 : vector<4x256xi1>, vector<4x256xf32>
    %c5 = arith.constant 5 : index
    %c0_38 = arith.constant 0 : index
    %c0_39 = arith.constant 0 : index
    %74 = vector.load %arg2[%c5, %c0_38, %c0_39] : memref<9x8x4xbf16, #tpu.memory_space<vmem>>, vector<1x8x4xbf16>
    %75 = vector.shape_cast %74 : vector<1x8x4xbf16> to vector<8x4xbf16>
    %76 = arith.truncf %73 : vector<4x256xf32> to vector<4x256xbf16>
    %cst_40 = arith.constant dense<0.000000e+00> : vector<8x256xf32>
    %77 = tpu.matmul %75, %76, %cst_40 {dimension_numbers = #tpu.dot_dimension_numbers<[1], [0], [0], [1], [0, 0, 1, 1], [], []>} : vector<8x4xbf16>, vector<4x256xbf16>, vector<8x256xf32> -> vector<8x256xf32>
    %78 = arith.addf %68, %77 : vector<8x256xf32>
    %c0_41 = arith.constant 0 : index
    %c143 = arith.constant 143 : index
    %79 = vector.load %arg7[%c0_41, %c143] : memref<4x401xf32, #tpu.memory_space<vmem>>, vector<4x256xf32>
    %cst_42 = arith.constant 0.000000e+00 : f32
    %80 = vector.shape_cast %25 : vector<1x256xi1> to vector<1x256xi1>
    %81 = vector.broadcast %80 : vector<1x256xi1> to vector<4x256xi1>
    %82 = vector.broadcast %cst_42 : f32 to vector<4x256xf32>
    %83 = arith.select %81, %79, %82 : vector<4x256xi1>, vector<4x256xf32>
    %c6 = arith.constant 6 : index
    %c0_43 = arith.constant 0 : index
    %c0_44 = arith.constant 0 : index
    %84 = vector.load %arg2[%c6, %c0_43, %c0_44] : memref<9x8x4xbf16, #tpu.memory_space<vmem>>, vector<1x8x4xbf16>
    %85 = vector.shape_cast %84 : vector<1x8x4xbf16> to vector<8x4xbf16>
    %86 = arith.truncf %83 : vector<4x256xf32> to vector<4x256xbf16>
    %cst_45 = arith.constant dense<0.000000e+00> : vector<8x256xf32>
    %87 = tpu.matmul %85, %86, %cst_45 {dimension_numbers = #tpu.dot_dimension_numbers<[1], [0], [0], [1], [0, 0, 1, 1], [], []>} : vector<8x4xbf16>, vector<4x256xbf16>, vector<8x256xf32> -> vector<8x256xf32>
    %88 = arith.addf %78, %87 : vector<8x256xf32>
    %c0_46 = arith.constant 0 : index
    %c144 = arith.constant 144 : index
    %89 = vector.load %arg7[%c0_46, %c144] : memref<4x401xf32, #tpu.memory_space<vmem>>, vector<4x256xf32>
    %c7 = arith.constant 7 : index
    %c0_47 = arith.constant 0 : index
    %c0_48 = arith.constant 0 : index
    %90 = vector.load %arg2[%c7, %c0_47, %c0_48] : memref<9x8x4xbf16, #tpu.memory_space<vmem>>, vector<1x8x4xbf16>
    %91 = vector.shape_cast %90 : vector<1x8x4xbf16> to vector<8x4xbf16>
    %92 = arith.truncf %89 : vector<4x256xf32> to vector<4x256xbf16>
    %cst_49 = arith.constant dense<0.000000e+00> : vector<8x256xf32>
    %93 = tpu.matmul %91, %92, %cst_49 {dimension_numbers = #tpu.dot_dimension_numbers<[1], [0], [0], [1], [0, 0, 1, 1], [], []>} : vector<8x4xbf16>, vector<4x256xbf16>, vector<8x256xf32> -> vector<8x256xf32>
    %94 = arith.addf %88, %93 : vector<8x256xf32>
    %c0_50 = arith.constant 0 : index
    %c145 = arith.constant 145 : index
    %95 = vector.load %arg7[%c0_50, %c145] : memref<4x401xf32, #tpu.memory_space<vmem>>, vector<4x256xf32>
    %cst_51 = arith.constant 0.000000e+00 : f32
    %96 = vector.shape_cast %27 : vector<1x256xi1> to vector<1x256xi1>
    %97 = vector.broadcast %96 : vector<1x256xi1> to vector<4x256xi1>
    %98 = vector.broadcast %cst_51 : f32 to vector<4x256xf32>
    %99 = arith.select %97, %95, %98 : vector<4x256xi1>, vector<4x256xf32>
    %c8 = arith.constant 8 : index
    %c0_52 = arith.constant 0 : index
    %c0_53 = arith.constant 0 : index
    %100 = vector.load %arg2[%c8, %c0_52, %c0_53] : memref<9x8x4xbf16, #tpu.memory_space<vmem>>, vector<1x8x4xbf16>
    %101 = vector.shape_cast %100 : vector<1x8x4xbf16> to vector<8x4xbf16>
    %102 = arith.truncf %99 : vector<4x256xf32> to vector<4x256xbf16>
    %cst_54 = arith.constant dense<0.000000e+00> : vector<8x256xf32>
    %103 = tpu.matmul %101, %102, %cst_54 {dimension_numbers = #tpu.dot_dimension_numbers<[1], [0], [0], [1], [0, 0, 1, 1], [], []>} : vector<8x4xbf16>, vector<4x256xbf16>, vector<8x256xf32> -> vector<8x256xf32>
    %104 = arith.addf %94, %103 : vector<8x256xf32>
    %c0_55 = arith.constant 0 : index
    %c0_56 = arith.constant 0 : index
    %105 = vector.load %arg3[%c0_55, %c0_56] : memref<8x1xf32, #tpu.memory_space<vmem>>, vector<8x1xf32>
    %106 = vector.broadcast %105 : vector<8x1xf32> to vector<8x256xf32>
    %107 = arith.addf %104, %106 : vector<8x256xf32>
    %cst_57 = arith.constant 0.000000e+00 : f32
    %108 = vector.broadcast %cst_57 : f32 to vector<8x256xf32>
    %109 = arith.maximumf %107, %108 : vector<8x256xf32>
    %c0_58 = arith.constant 0 : index
    %c0_59 = arith.constant 0 : index
    %110 = vector.load %arg4[%c0_58, %c0_59] : memref<4x8xf32, #tpu.memory_space<vmem>>, vector<4x8xf32>
    %cst_60 = arith.constant dense<0.000000e+00> : vector<4x256xf32>
    %111 = tpu.matmul %110, %109, %cst_60 {dimension_numbers = #tpu.dot_dimension_numbers<[1], [0], [0], [1], [0, 0, 1, 1], [], []>} : vector<4x8xf32>, vector<8x256xf32>, vector<4x256xf32> -> vector<4x256xf32>
    %c0_61 = arith.constant 0 : index
    %c0_62 = arith.constant 0 : index
    %112 = vector.load %arg5[%c0_61, %c0_62] : memref<4x1xf32, #tpu.memory_space<vmem>>, vector<4x1xf32>
    %113 = vector.broadcast %112 : vector<4x1xf32> to vector<4x256xf32>
    %114 = arith.addf %111, %113 : vector<4x256xf32>
    %c0_63 = arith.constant 0 : index
    %c0_64 = arith.constant 0 : index
    %c0_65 = arith.constant 0 : index
    %115 = vector.load %arg6[%c0_63, %c0_64, %c0_65] : memref<1x4x256xf32, #tpu.memory_space<vmem>>, vector<1x4x256xf32>
    %116 = vector.shape_cast %115 : vector<1x4x256xf32> to vector<4x256xf32>
    %117 = vector.shape_cast %114 : vector<4x256xf32> to vector<1x4x256xf32>
    tpu.vector_store %arg6[%c0_63, %c0_64, %c0_65], %117 {strides = array<i32>} : memref<1x4x256xf32, #tpu.memory_space<vmem>>, vector<1x4x256xf32>,
    return
  }
  func.func @transform_0(%arg0: i32) -> (i32, i32, i32) {
    %c0_i32 = arith.constant 0 : i32
    %c0_i32_0 = arith.constant 0 : i32
    %c0_i32_1 = arith.constant 0 : i32
    return %arg0, %c0_i32, %c0_i32_0 : i32, i32, i32
  }
  func.func @transform_1(%arg0: i32) -> (i32, i32, i32) {
    %c0_i32 = arith.constant 0 : i32
    %c0_i32_0 = arith.constant 0 : i32
    %c0_i32_1 = arith.constant 0 : i32
    %c0_i32_2 = arith.constant 0 : i32
    return %c0_i32, %c0_i32_0, %c0_i32_1 : i32, i32, i32
  }
  func.func @transform_2(%arg0: i32) -> (i32, i32) {
    %c0_i32 = arith.constant 0 : i32
    %c0_i32_0 = arith.constant 0 : i32
    %c0_i32_1 = arith.constant 0 : i32
    return %c0_i32, %c0_i32_0 : i32, i32
  }
  func.func @transform_3(%arg0: i32) -> (i32, i32) {
    %c0_i32 = arith.constant 0 : i32
    %c0_i32_0 = arith.constant 0 : i32
    %c0_i32_1 = arith.constant 0 : i32
    return %c0_i32, %c0_i32_0 : i32, i32
  }
  func.func @transform_4(%arg0: i32) -> (i32, i32) {
    %c0_i32 = arith.constant 0 : i32
    %c0_i32_0 = arith.constant 0 : i32
    %c0_i32_1 = arith.constant 0 : i32
    return %c0_i32, %c0_i32_0 : i32, i32
  }
  func.func @transform_5(%arg0: i32) -> (i32, i32, i32) {
    %c0_i32 = arith.constant 0 : i32
    %c0_i32_0 = arith.constant 0 : i32
    %c0_i32_1 = arith.constant 0 : i32
    return %arg0, %c0_i32, %c0_i32_0 : i32, i32, i32
  }
}

</mosaic_0001>

<bundles_post_ra>
// kernel: tpu_custom_call.1
= control target key start
LH: loop header
LB: loop body
LE: loop exit
PB: predicated region body
PF: predicated region fallthrough
CT: control target
= control target key end

     0   :  { %10 = vsyncpa [#allocation4], 0  ;;  %s1535_s0 = inlined_call_operand.vmem [shape: f32[2,4,256], index: 0, kind: input, shape index: {}]   ;;  %s1536_s1 = inlined_call_operand.vmem [shape: bf16[9,8,4], index: 1, kind: input, shape index: {}]   ;;  %s1537_s2 = inlined_call_operand.vmem [shape: f32[8,1], index: 2, kind: input, shape index: {}]   ;;  %s1538_s3 = inlined_call_operand.vmem [shape: f32[4,8], index: 3, kind: input, shape index: {}]   ;;  %s1539_s4 = inlined_call_operand.vmem [shape: f32[4,1], index: 4, kind: input, shape index: {}]   ;;  %s1540_s5 = inlined_call_operand.hbm [shape: f32[2,4,256], index: 5, kind: output, shape index: {}]  }
   0x1   :  { %12 = vsyncpa [#allocation4 + $0x1], 0  ;;  %s1311_s18 = smov 0   ;;  %s1313_s19 = smov 0  }
   0x2   :  { %s1315_s20 = smov 0   ;;  %s1317_s21 = smov 0  }
   0x3 LB: > { %s1332_s22 = sadd.s32 4294967295, %s1268_s21   ;;  %s1084_s23 = sadd.s32 4294967294, %s1268_s21   ;;  %s1268_s21 = sphi %s1317_s21, %s1554_s21   ;;  %s1264_s20 = sphi %s1315_s20, %s1553_s20   ;;  %s1260_s19 = sphi %s1313_s19, %s1552_s19   ;;  %s1256_s18 = sphi %s1311_s18, %s1551_s18  }
   0x4   : > { %s1336_s24 = sadd.s32 1, %s1268_s21   ;;  %s135_s25 = sadd.s32 1, %s1264_s20 }
   0x5   : > { %s132_s26 = ssub.s32 %s1268_s21, %s1336_s24  ;;  %p145_p0 = scmp.ne.s32.totalorder %s1264_s20, %s1260_s19 }
   0x6   : > { %p133_p1 = scmp.eq.s32.totalorder %s132_s26, 0  ;;  %p146_p2 = scmp.eq.s32.totalorder %s1332_s22, 1 }
   0x7   : > { %p151_p3 = scmp.ne.s32.totalorder %s1260_s19, %s1256_s18  ;;  %p152_p4 = scmp.eq.s32.totalorder %s1084_s23, 1 }
   0x8   : > { %s1347_s27 = scalar_select %p133_p1, %s1264_s20, %s135_s25  }
   0x9   : > { %p1349_p5 = por %p146_p2, %p145_p0  ;;  %p1353_p6 = por %p152_p4, %p151_p3 }
   0xa   : > { %p1087_p7 = scmp.ge.s32.totalorder %s1268_s21, 1  ;;  %p190_p8 = scmp.lt.s32.totalorder %s1268_s21, 3 }
   0xc   : > { %p191_p9 = pnand %p1087_p7, %p190_p8 }
   0xd   : > { %p218_p10 = scmp.lt.s32.totalorder (!%p191_p9), %s1332_s22, 1  ;;  %s1272_s10 = smov (!%p191_p9), 16  }
   0xe   : > { %194 = sbr.rel (%p191_p9) target bundleno = 608 (0x260), region = 40  ;;  %s1273_s11 = smov (!%p191_p9), 17  }
   0xf   : > { %s1274_s12 = smov (!%p191_p9), 15   ;;  %s1275_s13 = smov (!%p191_p9), 1  }
  0x10   : > { %s1276_s14 = smov (!%p191_p9), 127   ;;  %s1277_s15 = smov (!%p191_p9), 113  }
  0x11   : > { %s1278_s16 = smov (!%p191_p9), 111   ;;  %s1279_s17 = smov (!%p191_p9), 112  }
  0x12   : > { %s1280_s26 = smov (!%p191_p9), [#allocation3]  }
  0x13   : > { %vm225_vm0 = vcmask 134144   ;;  %v1270_v0 = vmov 0.0   ;;  %s219_s30 = scalar_select %p218_p10, %s1332_s22, 1  ;;  %v1271_v2 = vmov 0   ;;  %v913_v21 = vld [vmem:[%s1537_s2] sm:$0xff]  ;;  %v229_v22 = vlaneseq }
  0x14   : > { %224 = vst [vmem:[#allocation2] sm:$0xf] %v1270_v0  ;;  %226 = vst.msk [vmem:[#allocation2 + $0xc] sm:$0xf] %vm225_vm0, %v1270_v0  ;;  %346 = vmatprep.mubr.bf16.mxu0 %v1271_v2  ;;  %396 = vmatprep.mubr.bf16.mxu1 %v1271_v2  ;;  %vm300_vm1 = vcmask 130048   ;;  %vm307_vm2 = vcmask 1041408  }
  0x15   : > { %s1123_s6 = sshll.u32 %s219_s30, 3  ;;  %1204 = vset.pattern.permute.xlu0 %v1271_v2  ;;  %1205 = vset.pattern.permute.xlu1 %v1271_v2  ;;  %v230_v23 = vand.u32 127, %v229_v22  ;;  %vm275_vm3 = vcmask 138240   ;;  %v1091_v37 = vld [vmem:[%s1536_s1 + $0x4] sm:$0xf]  ;;  %vm303_vm5 = vcmask 31744  }
  0x16   : > { %s222_s9 = scalar_lea.vmem %s1535_s0, %s1123_s6  ;;  %vm420_vm7 = vcmask 121856   ;;  %vm494_vm10 = vcmask 7168   ;;  %v282_v61 = vld [vmem:[%s1536_s1] sm:$0xf]  ;;  %vm628_vm11 = vcmask 1039360   ;;  %vm702_vm12 = vcmask 924672  }
  0x17   : > { %v227_v1 = vld [vmem:[%s222_s9] sm:$0xff]  ;;  %v231_v24 = vadd.s32 128, %v230_v23  ;;  %v236_v27 = vand.u32 15, %v230_v23  ;;  %vm850_vm13 = vcmask 908288   ;;  %vm784_vm14 = vcmask 916480   ;;  %s1212_s30 = sshll.u32 %s1280_s26, 4  ;;  %s1213_s30 = int_to_ptr.vmem [resolvable:$false] %s1212_s30 }
  0x18   : > { %228 = vst [vmem:[#allocation2 + $0x4] sm:$0xff] %v227_v1  ;;  %v621_v10 = vcombine.high %v227_v1, %v227_v1  ;;  %v1370_v16 = vpack.c.bf16 %v227_v1, %v227_v1  ;;  %vm930_vm15 = vcmask 64512  }
  0x19   : > { %v243_v28 = vand.u32 15, %v231_v24  ;;  %vm1379_vm4 = vcmp.ge.s32.totalorder %v236_v27, 1  ;;  %vm1395_vm8 = vcmp.le.s32.totalorder %v236_v27, 14 }
  0x1a   : > { %v1189_v12 = vpack.i.bf16 %v621_v10, %v227_v1  ;;  %v1373_v20 = vpack.c.bf16 %v621_v10, %v621_v10 }
  0x1b   : > { %v618_v14 = vld [vmem:[#allocation2 + $0xc] sm:$0xf]  ;;  %vm1388_vm6 = vcmp.ge.s32.totalorder %v243_v28, 1  ;;  %vm1403_vm9 = vcmp.le.s32.totalorder %v243_v28, 14 }
  0x1c   : > { %v692_v15 = vld [vmem:[#allocation2 + $0xc] sm:$0xf] }
  0x1d   : > { %v840_v17 = vld [vmem:[#allocation2 + $0xc] sm:$0xf] }
  0x1e   : > { %v766_v18 = vld [vmem:[#allocation2 + $0xc] sm:$0xf] }
  0x1f   : > { %v260_v3 = vld [vmem:[#allocation2] sm:$0xff]  ;;  %v261_v4 = vld [vmem:[#allocation2 + $0x8] sm:$0xf]  ;;  %v774_v19 = vpack.c.bf16 %v766_v18, %v766_v18 }
  0x20   : > { %v288_v5 = vpack.c.bf16 %v260_v3, %v260_v3  ;;  %v290_v6 = vpack.c.bf16 %v261_v4, %v261_v4  ;;  %v268_v7 = vcombine.high %v260_v3, %v260_v3  ;;  %v406_v11 = vld [vmem:[#allocation2 + $0x8] sm:$0xf] }
  0x21   : > { %v484_v13 = vld [vmem:[#allocation2 + $0x8] sm:$0xf] }
  0x22   : > { %294 = vrot.lane.b32.xlu0 %v288_v5, %s1272_s10  ;;  %298 = vrot.lane.b32.xlu1 %v290_v6, %s1272_s10  ;;  %v289_v8 = vpack.c.bf16 %v268_v7, %v268_v7  ;;  %v1174_v9 = vpack.i.bf16 %v268_v7, %v260_v3 }
  0x26   : > { %296 = vrot.lane.b32.xlu0 %v289_v8, %s1272_s10  ;;  %1175 = vrot.lane.b32.xlu1 %v1174_v9, %s1273_s11  ;;  %s215_s10 = sand.u32 1, %s1260_s19  }
  0x27   : > { %s1011_s23 = scalar_lea.sflag [#allocation4], %s215_s10 }
  0x2a   : > { %273 = vrot.lane.b32.xlu0 %v261_v4, %s1273_s11  ;;  %1180 = vrot.lane.b32.xlu1 %v1174_v9, %s1274_s12  ;;  %s1088_s11 = sshll.u32 %s215_s10, 3 }
  0x2e   : > { %418 = vrot.lane.b32.xlu0 %v406_v11, %s1274_s12  ;;  %1185 = vrot.lane.b32.xlu1 %v1174_v9, %s1275_s13  ;;  %v1096_v11 = vld [vmem:[%s1536_s1 + $0x8] sm:$0xf]  ;;  %s1124_s12 = sshll.u32 %s1332_s22, 7  ;;  %s1214_s22 = scalar_lea.vmem %s1213_s30, 256 }
  0x32   : > { %492 = vrot.lane.b32.xlu0 %v484_v13, %s1275_s13  ;;  %1190 = vrot.lane.b32.xlu1 %v1189_v12, %s1276_s14  ;;  %s217_s13 = scalar_lea.vmem [#allocation3], %s1088_s11 }
  0x36   : > { %1195 = vrot.lane.b32.xlu1 %v1189_v12, %s1277_s15  ;;  %626 = vrot.lane.b32.xlu0 %v618_v14, %s1276_s14  ;;  %s1025_s14 = sshll.u32 %s217_s13, 4  ;;  %s1026_s14 = int_to_ptr.vmem [resolvable:$true] %s1025_s14 }
  0x37   : > { %s1208_s25 = scalar_lea.vmem %s1026_s14, 128  ;;  %p1215_p0 = scmp.lt.s32.totalorder %s1026_s14, %s1213_s30 }
  0x38   : > { %p1209_p11 = scmp.ne.s32.totalorder %s1026_s14, %s1208_s25  ;;  %p1216_p1 = scmp.lt.s32.totalorder %s1214_s22, %s1208_s25 }
  0x3a   : > { %1200 = vrot.lane.b32.xlu1 %v1189_v12, %s1278_s16  ;;  %700 = vrot.lane.b32.xlu0 %v692_v15, %s1277_s15  ;;  %v569_v15 = vsel %vm307_vm2, %v1370_v16, 0  ;;  %p1210_p12 = pnand %p1209_p11, %p1349_p5  ;;  %p1217_p2 = por %p1216_p1, %p1215_p0 }
  0x3c   : > { %p1211_p13 = pneg %p1210_p12 }
  0x3e   : > { %778 = vrot.lane.b32.xlu1 %v1370_v16, %s1279_s17  ;;  %848 = vrot.lane.b32.xlu0 %v840_v17, %s1278_s16  ;;  %v1099_v16 = vld [vmem:[%s1536_s1 + $0xc] sm:$0xf]  ;;  %p1218_p3 = pnand %p1217_p2, %p1211_p13 }
  0x42   : > { %782 = vrot.lane.b32.xlu1 %v774_v19, %s1279_s17  ;;  %780 = vrot.lane.b32.xlu0 %v1373_v20, %s1279_s17  ;;  %s1023_s17 = scalar_lea.hbm %s1540_s5, %s1124_s12 }
  0x46   : > { %916 = vperm.xlu0 %1204, %v913_v21  }
  0x94   : > { %v295_v25 = vpop.permute.xlu0 %294  ;;  %v299_v26 = vpop.permute.xlu1 %298 }
  0x98   : > { %v297_v29 = vpop.permute.xlu0 %296  ;;  %v1176_v30 = vpop.permute.xlu1 %1175 }
  0x99   : > { %v1178_v32 = vunpack.i.h.bf16 %v1176_v30  ;;  %v1177_v33 = vunpack.i.l.bf16 %v1176_v30  ;;  %v302_v34 = vsel %vm300_vm1, %v297_v29, %v299_v26  ;;  %v301_v35 = vsel %vm300_vm1, %v295_v25, %v297_v29 }
  0x9a   : > { %1092 = vmatprep.subr.msk.bf16.mxu0 %vm307_vm2, %v302_v34  ;;  %v309_v36 = vsel %vm307_vm2, %v301_v35, 0 }
  0x9b   : > { %329 = vmatpush1.bf16.msra.mxu0 %v309_v36  ;;  %v276_v39 = vsel %vm275_vm3, %v1177_v33, %v1178_v32 }
  0x9c   : > { %v274_v40 = vpop.permute.xlu0 %273  ;;  %v1181_v41 = vpop.permute.xlu1 %1180  ;;  %v280_v42 = vsel %vm1379_vm4, %v276_v39, 0.0 }
  0x9d   : > { %v277_v44 = vsel %vm275_vm3, %v1178_v32, %v274_v40  ;;  %v1183_v45 = vunpack.i.h.bf16 %v1181_v41  ;;  %v1182_v46 = vunpack.i.l.bf16 %v1181_v41  ;;  %v283_v47 = vpack.c.bf16 %v280_v42, %v280_v42 }
  0x9e   : > { %1093 = vmatmul.mubr.msk.bf16.vlgmr.msra.gmra.mxu0 %vm303_vm5, %v1091_v37  ;;  %v281_v48 = vsel %vm1388_vm6, %v277_v44, 0.0  ;;  %v1102_v37 = vld [vmem:[%s1536_s1 + $0x10] sm:$0xf] }
  0x9f   : > { %v421_v50 = vsel %vm420_vm7, %v1182_v46, %v1183_v45  ;;  %v284_v51 = vpack.c.bf16 %v281_v48, %v281_v48  ;;  %v359_v52 = vsel %vm307_vm2, %v283_v47, 0  ;;  %472 = vmatprep.mubr.bf16.mxu0 %v1271_v2  ;;  %v1105_v46 = vld [vmem:[%s1536_s1 + $0x14] sm:$0xf] }
  0xa0   : > { %v419_v53 = vpop.permute.xlu0 %418  ;;  %v1186_v54 = vpop.permute.xlu1 %1185  ;;  %v425_v55 = vsel %vm1395_vm8, %v421_v50, 0.0 }
  0xa1   : > { %v422_v56 = vsel %vm420_vm7, %v1183_v45, %v419_v53  ;;  %v1188_v57 = vunpack.i.h.bf16 %v1186_v54  ;;  %v1187_v58 = vunpack.i.l.bf16 %v1186_v54  ;;  %1094 = vmatprep.subr.msk.bf16.mxu1 %vm307_vm2, %v284_v51  ;;  %v429_v59 = vpack.c.bf16 %v425_v55, %v425_v55  ;;  %v1108_v53 = vld [vmem:[%s1536_s1 + $0x18] sm:$0xf]  ;;  %v1111_v55 = vld [vmem:[%s1536_s1 + $0x1c] sm:$0xf] }
  0xa2   : > { %v426_v60 = vsel %vm1403_vm9, %v422_v56, 0.0  ;;  %379 = vmatpush1.bf16.msra.mxu1 %v359_v52  ;;  %v1114_v56 = vld [vmem:[%s1536_s1 + $0x20] sm:$0xf] }
  0xa3   : > { %v430_v62 = vpack.c.bf16 %v426_v60, %v426_v60  ;;  %v495_v63 = vsel %vm494_vm10, %v1187_v58, %v1188_v57  ;;  %v435_v1 = vsel %vm307_vm2, %v429_v59, 0 }
  0xa4   : > { %v493_v3 = vpop.permute.xlu0 %492  ;;  %v1191_v4 = vpop.permute.xlu1 %1190  ;;  %v499_v5 = vsel %vm1379_vm4, %v495_v63, 0.0 }
  0xa5   : > { %v496_v6 = vsel %vm494_vm10, %v1188_v57, %v493_v3  ;;  %v1193_v7 = vunpack.i.h.bf16 %v1191_v4  ;;  %v1192_v8 = vunpack.i.l.bf16 %v1191_v4  ;;  %1095 = vmatmul.mubr.msk.bf16.vlgmr.msra.gmra.mxu1 %vm303_vm5, %v282_v61  ;;  %1097 = vmatprep.subr.msk.bf16.mxu0 %vm307_vm2, %v430_v62  ;;  %v503_v9 = vpack.c.bf16 %v499_v5, %v499_v5  ;;  %v924_v57 = vld [vmem:[%s1539_s4] sm:$0xf] }
  0xa6   : > { %v500_v10 = vsel %vm1388_vm6, %v496_v6, 0.0  ;;  %455 = vmatpush1.bf16.msra.mxu0 %v435_v1  ;;  %546 = vmatprep.mubr.bf16.mxu1 %v1271_v2 }
  0xa7   : > { %v504_v12 = vpack.c.bf16 %v500_v10, %v500_v10  ;;  %v629_v13 = vsel %vm628_vm11, %v1192_v8, %v1193_v7  ;;  %v509_v14 = vsel %vm307_vm2, %v503_v9, 0  ;;  %1103 = vmatprep.subr.msk.bf16.mxu0 %vm307_vm2, %v1373_v20  ;;  %927 = vperm.xlu1 %1205, %v924_v57  }
  0xa8   : > { %v1196_v17 = vpop.permute.xlu1 %1195  ;;  %v627_v18 = vpop.permute.xlu0 %626  ;;  %v633_v19 = vsel %vm1395_vm8, %v629_v13, 0.0 }
  0xa9   : > { %v1198_v21 = vunpack.i.h.bf16 %v1196_v17  ;;  %v1197_v22 = vunpack.i.l.bf16 %v1196_v17  ;;  %1098 = vmatmul.mubr.msk.bf16.vlgmr.msra.gmra.mxu0 %vm303_vm5, %v1096_v11  ;;  %1100 = vmatprep.subr.msk.bf16.mxu1 %vm307_vm2, %v504_v12  ;;  %v630_v23 = vsel %vm628_vm11, %v1193_v7, %v627_v18  ;;  %v637_v24 = vpack.c.bf16 %v633_v19, %v633_v19 }
  0xaa   : > { %v634_v20 = vsel %vm1403_vm9, %v630_v23, 0.0  ;;  %529 = vmatpush1.bf16.msra.mxu1 %v509_v14  ;;  %589 = vmatpush1.bf16.msra.mxu0 %v569_v15 }
  0xab   : > { %v638_v25 = vpack.c.bf16 %v634_v20, %v634_v20  ;;  %v703_v26 = vsel %vm702_vm12, %v1197_v22, %v1198_v21  ;;  %606 = vmatprep.mubr.bf16.mxu0 %v1271_v2  ;;  %v643_v27 = vsel %vm307_vm2, %v637_v24, 0 }
  0xac   : > { %v1201_v28 = vpop.permute.xlu1 %1200  ;;  %v701_v29 = vpop.permute.xlu0 %700  ;;  %v707_v30 = vsel %vm1379_vm4, %v703_v26, 0.0 }
  0xad   : > { %v1203_v32 = vunpack.i.h.bf16 %v1201_v28  ;;  %v1202_v33 = vunpack.i.l.bf16 %v1201_v28  ;;  %1101 = vmatmul.mubr.msk.bf16.vlgmr.msra.gmra.mxu1 %vm303_vm5, %v1099_v16  ;;  %v704_v34 = vsel %vm702_vm12, %v1198_v21, %v701_v29  ;;  %1106 = vmatprep.subr.msk.bf16.mxu1 %vm307_vm2, %v638_v25  ;;  %v711_v35 = vpack.c.bf16 %v707_v30, %v707_v30 }
  0xae   : > { %v708_v36 = vsel %vm1388_vm6, %v704_v34, 0.0  ;;  %663 = vmatpush1.bf16.msra.mxu1 %v643_v27  ;;  %680 = vmatprep.mubr.bf16.mxu1 %v1271_v2 }
  0xaf   : > { %v712_v31 = vpack.c.bf16 %v708_v36, %v708_v36  ;;  %v851_v39 = vsel %vm850_vm13, %v1202_v33, %v1203_v32  ;;  %v717_v40 = vsel %vm307_vm2, %v711_v35, 0 }
  0xb0   : > { %v779_v41 = vpop.permute.xlu1 %778  ;;  %v849_v42 = vpop.permute.xlu0 %848  ;;  %v855_v44 = vsel %vm1395_vm8, %v851_v39, 0.0 }
  0xb1   : > { %1104 = vmatmul.mubr.msk.bf16.vlgmr.msra.gmra.mxu0 %vm303_vm5, %v1102_v37  ;;  %v852_v38 = vsel %vm850_vm13, %v1203_v32, %v849_v42  ;;  %1109 = vmatprep.subr.msk.bf16.mxu0 %vm307_vm2, %v712_v31  ;;  %v859_v43 = vpack.c.bf16 %v855_v44, %v855_v44 }
  0xb2   : > { %v856_v45 = vsel %vm1403_vm9, %v852_v38, 0.0  ;;  %737 = vmatpush1.bf16.msra.mxu0 %v717_v40  ;;  %754 = vmatprep.mubr.bf16.mxu0 %v1271_v2 }
  0xb3   : > { %v860_v47 = vpack.c.bf16 %v856_v45, %v856_v45  ;;  %v865_v54 = vsel %vm307_vm2, %v859_v43, 0 }
  0xb4   : > { %v783_v48 = vpop.permute.xlu1 %782  ;;  %v781_v50 = vpop.permute.xlu0 %780 }
  0xb5   : > { %1107 = vmatmul.mubr.msk.bf16.vlgmr.msra.gmra.mxu1 %vm303_vm5, %v1105_v46  ;;  %v785_v51 = vsel %vm784_vm14, %v779_v41, %v781_v50  ;;  %v786_v52 = vsel %vm784_vm14, %v781_v50, %v783_v48  ;;  %1115 = vmatprep.subr.msk.bf16.mxu0 %vm307_vm2, %v860_v47 }
  0xb6   : > { %v791_v49 = vsel %vm307_vm2, %v785_v51, 0  ;;  %1112 = vmatprep.subr.msk.bf16.mxu1 %vm307_vm2, %v786_v52  ;;  %828 = vmatprep.mubr.bf16.mxu1 %v1271_v2  ;;  %v923_v52 = vld [vmem:[%s1538_s3] sm:$0xf] }
  0xb7   : > { %811 = vmatpush1.bf16.msra.mxu1 %v791_v49 }
  0xb9   : > { %1110 = vmatmul.mubr.msk.bf16.vlgmr.msra.gmra.mxu0 %vm303_vm5, %v1108_v53 }
  0xba   : > { %885 = vmatpush1.bf16.msra.mxu0 %v865_v54  ;;  %902 = vmatprep.mubr.bf16.mxu0 %v1271_v2 }
  0xbd   : > { %1113 = vmatmul.mubr.msk.bf16.vlgmr.msra.gmra.mxu1 %vm303_vm5, %v1111_v55 }
  0xbe   : > { %998 = vmatprep.mubr.f32.mxu1 %v1270_v0 }
  0xc1   : > { %1116 = vmatmul.mubr.msk.bf16.vlgmr.msra.gmra.mxu0 %vm303_vm5, %v1114_v56  ;;  %v917_v42 = vpop.permute.xlu0 %916 }
 0x122   : > { %v928_v53 = vpop.permute.xlu1 %927 }
 0x15e   : > { %v348_v58 = vpop.f32.mrf.mxu0 }
 0x160   : > { %v350_v59 = vpop.f32.mrf.mxu0 }
 0x162   : > { %v352_v60 = vpop.f32.mrf.mxu0 }
 0x164   : > { %v353_v61 = vpop.f32.mrf.mxu0 }
 0x165   : > { %v398_v2 = vpop.f32.mrf.mxu1 }
 0x166   : > { %v399_v12 = vadd.f32 %v398_v2, %v348_v58 }
 0x167   : > { %v400_v62 = vpop.f32.mrf.mxu1 }
 0x168   : > { %v401_v15 = vadd.f32 %v400_v62, %v350_v59 }
 0x169   : > { %v402_v63 = vpop.f32.mrf.mxu1  ;;  %v474_v1 = vpop.f32.mrf.mxu0 }
 0x16a   : > { %v481_v17 = vadd.f32 %v474_v1, %v399_v12 }
 0x16b   : > { %v403_v3 = vpop.f32.mrf.mxu1  ;;  %v476_v4 = vpop.f32.mrf.mxu0 }
 0x16c   : > { %v482_v21 = vadd.f32 %v476_v4, %v401_v15 }
 0x16d   : > { %v478_v5 = vpop.f32.mrf.mxu0  ;;  %v548_v6 = vpop.f32.mrf.mxu1 }
 0x16e   : > { %v555_v22 = vadd.f32 %v548_v6, %v481_v17 }
 0x16f   : > { %v479_v0 = vpop.f32.mrf.mxu0  ;;  %v550_v7 = vpop.f32.mrf.mxu1 }
 0x170   : > { %v556_v20 = vadd.f32 %v550_v7, %v482_v21 }
 0x171   : > { %v552_v8 = vpop.f32.mrf.mxu1  ;;  %v608_v9 = vpop.f32.mrf.mxu0 }
 0x172   : > { %v615_v16 = vadd.f32 %v608_v9, %v555_v22 }
 0x173   : > { %v553_v10 = vpop.f32.mrf.mxu1  ;;  %v610_v11 = vpop.f32.mrf.mxu0 }
 0x174   : > { %v616_v27 = vadd.f32 %v610_v11, %v556_v20 }
 0x175   : > { %v612_v13 = vpop.f32.mrf.mxu0  ;;  %v682_v14 = vpop.f32.mrf.mxu1 }
 0x176   : > { %v689_v28 = vadd.f32 %v682_v14, %v615_v16 }
 0x177   : > { %v613_v18 = vpop.f32.mrf.mxu0  ;;  %v684_v19 = vpop.f32.mrf.mxu1 }
 0x178   : > { %v690_v32 = vadd.f32 %v684_v19, %v616_v27 }
 0x179   : > { %v686_v23 = vpop.f32.mrf.mxu1  ;;  %v756_v24 = vpop.f32.mrf.mxu0 }
 0x17a   : > { %v763_v33 = vadd.f32 %v756_v24, %v689_v28 }
 0x17b   : > { %v687_v25 = vpop.f32.mrf.mxu1  ;;  %v758_v26 = vpop.f32.mrf.mxu0 }
 0x17c   : > { %v764_v36 = vadd.f32 %v758_v26, %v690_v32 }
 0x17d   : > { %v760_v29 = vpop.f32.mrf.mxu0  ;;  %v830_v30 = vpop.f32.mrf.mxu1 }
 0x17e   : > { %v837_v37 = vadd.f32 %v830_v30, %v763_v33 }
 0x17f   : > { %v761_v34 = vpop.f32.mrf.mxu0  ;;  %v832_v35 = vpop.f32.mrf.mxu1 }
 0x180   : > { %v838_v40 = vadd.f32 %v832_v35, %v764_v36 }
 0x181   : > { %v834_v31 = vpop.f32.mrf.mxu1  ;;  %v904_v39 = vpop.f32.mrf.mxu0 }
 0x182   : > { %v911_v41 = vadd.f32 %v904_v39, %v837_v37 }
 0x183   : > { %v835_v44 = vpop.f32.mrf.mxu1  ;;  %v906_v38 = vpop.f32.mrf.mxu0 }
 0x184   : > { %v912_v45 = vadd.f32 %v906_v38, %v838_v40  ;;  %v919_v46 = vadd.f32 %v917_v42, %v911_v41 }
 0x185   : > { %v908_v47 = vpop.f32.mrf.mxu0 }
 0x186   : > { %v920_v43 = vadd.f32 %v917_v42, %v912_v45  ;;  %v921_v51 = vmax.f32 %v919_v46, 0.0 }
 0x187   : > { %v909_v48 = vpop.f32.mrf.mxu0 }
 0x188   : > { %v922_v50 = vmax.f32 %v920_v43, 0.0 }
 0x18a   : > { %964 = vmatprep.subr.mxu1 %v922_v50 }
 0x18b   : > { %965 = vmatpush1.msra.mxu1 %v921_v51 }
 0x18c   : > { %1117 = vmatmul.mubr.msk.f32.vlgmr.msra.gmra.mxu1 %vm930_vm15, %v923_v52 }
 0x24c   : > { %v1000_v49 = vpop.f32.mrf.mxu1 }
 0x24d   : > { %v1001_v55 = vadd.f32 %v1000_v49, %v928_v53 }
 0x24e   : > { %v1002_v54 = vpop.f32.mrf.mxu1 }
 0x24f   : > { %v1003_v56 = vadd.f32 %v1002_v54, %v928_v53 }
 0x251   : > { %v1007_v57 = vcombine.low %v1001_v55, %v1003_v56 }
 0x253   : > { %1009 = vst [vmem:[%s217_s13] sm:$0xff] %v1007_v57 }
 0x254   : > { %1221 = shalt.err (!%p1218_p3)
}
 0x255   : > { %s1222_s6 = scalar_lea.hbm %s1023_s17, 128  ;;  %s1226_s9 = scalar_lea.hbm %s1540_s5, 256 }
 0x256   : > { %p1223_p4 = scmp.ne.s32.totalorder %s1023_s17, %s1222_s6  ;;  %p1227_p9 = scmp.lt.s32.totalorder %s1023_s17, %s1540_s5 }
 0x257   : > { %p1228_p10 = scmp.lt.s32.totalorder %s1226_s9, %s1222_s6 }
 0x258   : > { %p1224_p7 = pnand %p1223_p4, %p1349_p5 }
 0x259   : > { %p1229_p11 = por %p1228_p10, %p1227_p9 }
 0x25a   : > { %p1225_p8 = pneg %p1224_p7 }
 0x25c   : > { %p1230_p12 = pnand %p1229_p11, %p1225_p8 }
 0x25e   : > { %1233 = shalt.err (!%p1230_p12)
}
 0x25f   : > { %1125 = dma.vmem_to_hbm [thread:$0]  (%p1349_p5), %s1026_s14, 128, %s1023_s17, %s1011_s23  }
 0x260 PF: > { %p1131_p13 = scmp.ge.s32.totalorder %s1268_s21, 2  ;;  %s1037_s12 = sand.u32 1, %s1256_s18  }
 0x261   : > { %s1038_s13 = scalar_lea.sflag [#allocation4], %s1037_s12 }
 0x262   : > { %p1128_p0 = pnand %p1131_p13, %p1353_p6 }
 0x264   : > { %p1129_p1 = pneg %p1128_p0 }
 0x266   : > { %1251 = dma.done.wait (%p1129_p1), %s1038_s13, 128  }
 0x267   : > { %1253 = vsyncadd (%p1129_p1), %s1038_s13, 4294967168  ;;  %p15_p2 = scmp.ge.s32.totalorder %s1336_s24, 4   ;;  %s1551_s18 = smov %s1260_s19 }
 0x268   : > { %s1552_s19 = smov %s1264_s20  ;;  %s1553_s20 = smov %s1347_s27 }
 0x269   : > { %s1554_s21 = smov %s1336_s24  ;;  %17 = sbr.rel (!%p15_p2) target bundleno = 3 (0x3), region = 83 }
 0x26e   :  { %1043 = vsyncpa [#allocation4], 1 }
 0x26f   :  { %1045 = vsyncpa [#allocation4 + $0x1], 1 }

</bundles_post_ra>
